<compile_context>
chip_gen: v6e
topology: v6e:2x2x1
jax: 0.10.0
libtpu: 0.0.40
codegen_flags: <defaults>
</compile_context>

<pallas_src>
import functools

import jax
import jax.numpy as jnp
from jax.experimental import pallas as pl
from jax.experimental.pallas import tpu as pltpu


def _round_up(n, m):
    return ((n + m - 1) // m) * m


# ---------------------------------------------------------------------------
# Kernel: one fused affine  y = x @ W_eff + b_eff  on a batch tile.
# ---------------------------------------------------------------------------
def _fused_affine_kernel(x_ref, w_ref, b_ref, o_ref):
    # Cast on the VMEM tile (not in the wrapper) so x is read from HBM once.
    x = x_ref[...].astype(w_ref.dtype)
    acc = jnp.dot(x, w_ref[...], preferred_element_type=jnp.float32)
    o_ref[...] = (acc + b_ref[...]).astype(o_ref.dtype)


# ---------------------------------------------------------------------------
# One-time parameter fusion (exact for the forward pass; keep the per-layer
# weights around if per-layer gradients are ever needed).
# ---------------------------------------------------------------------------
def fuse_classifier_params(params, compute_dtype=jnp.float32):
    """Collapse the 4 bias-only Linear layers into a single padded affine."""
    w_eff = params["w1"].astype(jnp.float32)
    b_eff = params["b1"].astype(jnp.float32)
    for li in (2, 3, 4):
        wi = params[f"w{li}"].astype(jnp.float32)
        bi = params[f"b{li}"].astype(jnp.float32)
        w_eff = w_eff @ wi          # (D, out_li)
        b_eff = b_eff @ wi + bi     # (1, out_li)

    num_classes = w_eff.shape[1]
    n_pad = _round_up(num_classes, 128)          # lane-dense output slab
    pad = n_pad - num_classes
    w_eff = jnp.pad(w_eff, ((0, 0), (0, pad))).astype(compute_dtype)
    b_eff = jnp.pad(b_eff, ((0, 0), (0, pad)))   # bias stays f32 (added post-MXU)
    return w_eff, b_eff, num_classes


# ---------------------------------------------------------------------------
# Wrapper: batch-tiled pallas_call over the fused affine (ragged-safe grid).
# ---------------------------------------------------------------------------
@functools.partial(
    jax.jit, static_argnames=("num_classes", "block_b", "return_padded"))
def classifier_forward(x, w_eff, b_eff, *, num_classes, block_b=None,
                       return_padded=False):
    """x: (B, D). w_eff: (D, n_pad). b_eff: (1, n_pad). Returns (B, num_classes)
    (or the padded (B, n_pad) slab if return_padded=True, for fusable consumers)."""
    B, D = x.shape
    n_pad = w_eff.shape[1]
    out_dtype = x.dtype

    if block_b is None:
        # >=2 grid steps so v7x can shard the batch axis across both TCs;
        # tiles up to 1024 rows (multiple of 8) for the ~85% HBM-roofline regime.
        block_b = min(max(_round_up(pl.cdiv(B, 2), 8), 8), 1024)
    block_b = max(8, min(block_b, _round_up(B, 8)))

    grid = (pl.cdiv(B, block_b),)   # ragged last block handled by Pallas masking

    cost = pl.CostEstimate(
        flops=2 * B * D * n_pad,
        transcendentals=0,
        bytes_accessed=(B * D * x.dtype.itemsize
                        + D * n_pad * w_eff.dtype.itemsize
                        + n_pad * b_eff.dtype.itemsize
                        + B * n_pad * jnp.dtype(out_dtype).itemsize),
    )

    out = pl.pallas_call(
        _fused_affine_kernel,
        out_shape=jax.ShapeDtypeStruct((B, n_pad), out_dtype),
        grid_spec=pltpu.PrefetchScalarGridSpec(
            num_scalar_prefetch=0,
            grid=grid,
            in_specs=[
                pl.BlockSpec((block_b, D), lambda i: (i, 0)),   # activations
                pl.BlockSpec((D, n_pad), lambda i: (0, 0)),     # fused weight (resident)
                pl.BlockSpec((1, n_pad), lambda i: (0, 0)),     # fused bias (resident)
            ],
            out_specs=pl.BlockSpec((block_b, n_pad), lambda i: (i, 0)),
        ),
        compiler_params=pltpu.CompilerParams(
            dimension_semantics=("parallel",)),
        cost_estimate=cost,
    )(x, w_eff, b_eff)

    if return_padded:
        return out          # (B, n_pad): cols >= num_classes are exactly zero-weight
    return out[:, :num_classes]


# ---------------------------------------------------------------------------
# Deterministic synthetic init + pure-JAX reference.
# ---------------------------------------------------------------------------
def init_params(key, input_dim, num_classes, dtype=jnp.float32):
    """Shapes mirror the PyTorch module; weights stored as (in, out)."""
    dims = [input_dim, input_dim // 2, input_dim // 4, input_dim // 8, num_classes]
    params = {}
    for li in range(4):
        key, kw, kb = jax.random.split(key, 3)
        fan_in, fan_out = dims[li], dims[li + 1]
        scale = 1.0 / jnp.sqrt(jnp.float32(fan_in))
        params[f"w{li + 1}"] = (jax.random.normal(kw, (fan_in, fan_out), jnp.float32)
                                * scale).astype(dtype)
        params[f"b{li + 1}"] = (jax.random.normal(kb, (1, fan_out), jnp.float32)
                                * scale).astype(dtype)
    return params


def reference_forward(x, params):
    h = x.astype(jnp.float32)
    for li in range(1, 5):
        h = h @ params[f"w{li}"].astype(jnp.float32) + params[f"b{li}"].astype(jnp.float32)
    return h.astype(x.dtype)


if __name__ == "__main__":
    # Small shapes consistent with the module (input_dim scaled down from 768).
    input_dim = 256          # -> hidden dims 128, 64, 32
    num_classes = 31

    key = jax.random.PRNGKey(0)
    key, kx1, kx2 = jax.random.split(key, 3)
    params = init_params(key, input_dim, num_classes)

    # grad_reverse(x) is identity in the forward pass, so no op is needed here.
    # TODO(synk): GradReverse gradient scaling (backward-only) is not expressed
    # by this forward kernel; training would need a custom_vjp on unfused params.
    w_eff, b_eff, nc = fuse_classifier_params(params, compute_dtype=jnp.float32)

    # Case 1: batch divisible by the tile.
    x1 = jax.random.normal(kx1, (16, input_dim), jnp.float32)
    out1 = jax.block_until_ready(classifier_forward(x1, w_eff, b_eff, num_classes=nc))
    ref1 = reference_forward(x1, params)
    assert out1.shape == (16, num_classes)
    assert jnp.allclose(out1, ref1, atol=1e-3, rtol=1e-3), "mismatch (even batch)"

    # Case 2: ragged batch (not a multiple of the tile) exercises masked writeback.
    x2 = jax.random.normal(kx2, (13, input_dim), jnp.float32)
    out2 = jax.block_until_ready(classifier_forward(x2, w_eff, b_eff, num_classes=nc))
    ref2 = reference_forward(x2, params)
    assert out2.shape == (13, num_classes)
    assert jnp.allclose(out2, ref2, atol=1e-3, rtol=1e-3), "mismatch (ragged batch)"

    print("KERNEL_OK")
</pallas_src>

<mosaic_0001>
module attributes {stable_mosaic.version = 11 : i64} {
  func.func @_fused_affine_kernel(%arg0: i32, %arg1: memref<8x256xf32, #tpu.memory_space<vmem>>, %arg2: memref<256x128xf32, #tpu.memory_space<vmem>>, %arg3: memref<1x128xf32, #tpu.memory_space<vmem>>, %arg4: memref<8x128xf32, #tpu.memory_space<vmem>>) attributes {dimension_semantics = [#tpu.dimension_semantics<parallel>], iteration_bounds = array<i64: 2>, scalar_prefetch = 0 : i64, scratch_operands = 0 : i64, tpu.core_type = #tpu.core_type<tc>, window_params = [{transform_indices = @transform_0, window_bounds = array<i64: 8, 256>}, {pipeline_mode = #tpu.pipeline_mode<synchronous>, transform_indices = @transform_1, window_bounds = array<i64: 256, 128>}, {pipeline_mode = #tpu.pipeline_mode<synchronous>, transform_indices = @transform_2, window_bounds = array<i64: 1, 128>}, {transform_indices = @transform_3, window_bounds = array<i64: 8, 128>}]} {
    %c0 = arith.constant 0 : index
    %c0_0 = arith.constant 0 : index
    %0 = vector.load %arg1[%c0, %c0_0] : memref<8x256xf32, #tpu.memory_space<vmem>>, vector<8x256xf32>
    %c0_1 = arith.constant 0 : index
    %c0_2 = arith.constant 0 : index
    %1 = vector.load %arg2[%c0_1, %c0_2] : memref<256x128xf32, #tpu.memory_space<vmem>>, vector<256x128xf32>
    %cst = arith.constant dense<0.000000e+00> : vector<8x128xf32>
    %2 = tpu.matmul %0, %1, %cst {dimension_numbers = #tpu.dot_dimension_numbers<[1], [0], [0], [1], [0, 0, 1, 1], [], []>} : vector<8x256xf32>, vector<256x128xf32>, vector<8x128xf32> -> vector<8x128xf32>
    %c0_3 = arith.constant 0 : index
    %c0_4 = arith.constant 0 : index
    %3 = vector.load %arg3[%c0_3, %c0_4] : memref<1x128xf32, #tpu.memory_space<vmem>>, vector<1x128xf32>
    %4 = vector.broadcast %3 : vector<1x128xf32> to vector<8x128xf32>
    %5 = arith.addf %2, %4 : vector<8x128xf32>
    %c0_5 = arith.constant 0 : index
    %c0_6 = arith.constant 0 : index
    %6 = vector.load %arg4[%c0_5, %c0_6] : memref<8x128xf32, #tpu.memory_space<vmem>>, vector<8x128xf32>
    tpu.vector_store %arg4[%c0_5, %c0_6], %5 {strides = array<i32>} : memref<8x128xf32, #tpu.memory_space<vmem>>, vector<8x128xf32>,
    return
  }
  func.func @transform_0(%arg0: i32) -> (i32, i32) {
    %c0_i32 = arith.constant 0 : i32
    %c0_i32_0 = arith.constant 0 : i32
    return %arg0, %c0_i32 : i32, i32
  }
  func.func @transform_1(%arg0: i32) -> (i32, i32) {
    %c0_i32 = arith.constant 0 : i32
    %c0_i32_0 = arith.constant 0 : i32
    %c0_i32_1 = arith.constant 0 : i32
    return %c0_i32, %c0_i32_0 : i32, i32
  }
  func.func @transform_2(%arg0: i32) -> (i32, i32) {
    %c0_i32 = arith.constant 0 : i32
    %c0_i32_0 = arith.constant 0 : i32
    %c0_i32_1 = arith.constant 0 : i32
    return %c0_i32, %c0_i32_0 : i32, i32
  }
  func.func @transform_3(%arg0: i32) -> (i32, i32) {
    %c0_i32 = arith.constant 0 : i32
    %c0_i32_0 = arith.constant 0 : i32
    return %arg0, %c0_i32 : i32, i32
  }
}

</mosaic_0001>

<bundles_post_ra>
// kernel: classifier_forward.1
= control target key start
LH: loop header
LB: loop body
LE: loop exit
PB: predicated region body
PF: predicated region fallthrough
CT: control target
= control target key end

     0   :  { %8 = vsyncpa [#allocation3], 0  ;;  %s830_s0 = inlined_call_operand.hbm [shape: f32[16,256], index: 0, kind: input, shape index: {}]   ;;  %s831_s1 = inlined_call_operand.hbm [shape: f32[256,128], index: 1, kind: input, shape index: {}]   ;;  %s832_s2 = inlined_call_operand.vmem [shape: f32[1,128], index: 2, kind: input, shape index: {}]   ;;  %s833_s3 = inlined_call_operand.hbm [shape: f32[16,128], index: 3, kind: output, shape index: {}]  }
   0x1   :  { %10 = vsyncpa [#allocation3 + $0x1], 0 }
   0x2   :  { %11 = vsyncpa [#allocation6], 0 }
   0x3   :  { %12 = vsyncpa [#allocation4], 0 }
   0x4   :  { %14 = vsyncpa [#allocation4 + $0x1], 0  ;;  %s668_s12 = smov 0   ;;  %s670_s13 = smov 0  }
   0x5   :  { %s672_s14 = smov 0   ;;  %s674_s15 = smov 0  }
   0x6 LB: > { %s689_s16 = sadd.s32 4294967295, %s641_s15   ;;  %s408_s17 = sadd.s32 4294967294, %s641_s15   ;;  %s641_s15 = sphi %s674_s15, %s855_s15   ;;  %s637_s14 = sphi %s672_s14, %s854_s14   ;;  %s633_s13 = sphi %s670_s13, %s853_s13   ;;  %s629_s12 = sphi %s668_s12, %s852_s12  }
   0x7   : > { %p40_p0 = scmp.ne.s32.totalorder %s633_s13, %s629_s12  ;;  %p834_p1 = scmp.eq.s32.totalorder %s689_s16, 0 }
   0x8   : > { %p112_p3 = scmp.eq.s32.totalorder %s408_s17, 1  ;;  %p409_p5 = scmp.ge.s32.totalorder %s641_s15, 1 }
   0x9   : > { %p698_p4 = por %p834_p1, %p40_p0  ;;  %p119_p7 = scmp.lt.s32.totalorder %s641_s15, 3 }
   0xa   : > { %p703_p6 = por %p112_p3, %p40_p0  ;;  %s643_s21 = smov [#allocation5]  }
   0xb   : > { %s838_s18 = scalar_select %p698_p4, 1, 0 }
   0xc   : > { %s839_s19 = scalar_select %p703_p6, 1, 0 }
   0xd   : > { %p708_p8 = pnand %p409_p5, %p119_p7  ;;  %s131_s22 = sshll.u32 %s643_s21, 4  ;;  %s132_s22 = int_to_ptr.vmem [resolvable:$true] %s131_s22 }
   0xe   : > { %s722_s24 = sadd.s32 1, %s641_s15   ;;  %s27_s25 = sadd.s32 1, %s637_s14 }
   0xf   : > { %s840_s20 = scalar_select %p708_p8, 1, 0 }
  0x10   : > { %p468_p9 = pneg %p708_p8  ;;  %s24_s26 = ssub.s32 %s641_s15, %s722_s24 }
  0x11   : > { %s530_s27 = scalar_lea.vmem %s132_s22, 4096  ;;  %p538_p5 = scmp.lt.s32.totalorder %s132_s22, %s132_s22 }
  0x12   : > { %p717_p11 = pnand %p468_p9, %p834_p1  ;;  %p531_p13 = scmp.ne.s32.totalorder %s132_s22, %s530_s27 }
  0x13   : > { %p539_p7 = scmp.lt.s32.totalorder %s530_s27, %s530_s27 }
  0x14   : > { %p521_p12 = pneg %p717_p11 }
  0x15   : > { %p540_p10 = por %p539_p7, %p538_p5 }
  0x16   : > { %p533_p0 = pnand %p531_p13, %p521_p12 }
  0x18   : > { %p534_p3 = pneg %p533_p0 }
  0x1a   : > { %p541_p2 = pnand %p540_p10, %p534_p3 }
  0x1c   : > { %544 = shalt.err (!%p541_p2)
}
  0x1d   : > { %s644_s28 = smov 128   ;;  %s645_s29 = smov 8  }
  0x1e   : > { %471 = dma.hbm_to_vmem [thread:$0]  (!%p717_p11), %s831_s1, 4096, %s132_s22, [#allocation6], %s644_s28, %s644_s28, %s645_s29  }
  0x1f   : > { %p25_p9 = scmp.eq.s32.totalorder %s24_s26, 0  ;;  %p34_p12 = scmp.ne.s32.totalorder %s637_s14, %s633_s13 }
  0x20   : > { %p35_p10 = scmp.eq.s32.totalorder %s641_s15, 0  ;;  %p481_p2 = scmp.lt.s32.totalorder %s641_s15, 2 }
  0x21   : > { %s739_s5 = scalar_select %p25_p9, %s637_s14, %s27_s25  }
  0x22   : > { %p36_p13 = por %p35_p10, %p34_p12  ;;  %p842_p0 = scmp.eq.s32.totalorder %s689_s16, 1 }
  0x23   : > { %s148_s7 = sand.u32 1, %s637_s14   ;;  %s424_s8 = sshll.u32 %s641_s15, 8 }
  0x24   : > { %p743_p3 = por %p842_p0, %p34_p12  ;;  %s412_s9 = sshll.u32 %s148_s7, 4 }
  0x25   : > { %s752_s17 = scalar_lea.hbm %s830_s0, %s424_s8  ;;  %s152_s21 = scalar_lea.vmem [#allocation2], %s412_s9 }
  0x26   : > { %s843_s6 = scalar_select %p743_p3, 1, 0 }
  0x27   : > { %s160_s22 = sshll.u32 %s152_s21, 4  ;;  %p754_p11 = pnand %p481_p2, %p36_p13  ;;  %s161_s22 = int_to_ptr.vmem [resolvable:$true] %s160_s22 }
  0x28   : > { %s149_s25 = scalar_lea.sflag [#allocation3], %s148_s7  ;;  %s545_s26 = scalar_lea.hbm %s752_s17, 256 }
  0x29   : > { %p546_p5 = scmp.ne.s32.totalorder %s752_s17, %s545_s26  ;;  %p547_p7 = pneg %p754_p11 }
  0x2a   : > { %s550_s29 = scalar_lea.hbm %s830_s0, 512  ;;  %p551_p10 = scmp.lt.s32.totalorder %s752_s17, %s830_s0 }
  0x2b   : > { %p548_p9 = pnand %p547_p7, %p546_p5  ;;  %p552_p2 = scmp.lt.s32.totalorder %s550_s29, %s545_s26 }
  0x2d   : > { %p549_p12 = pneg %p548_p9  ;;  %p553_p13 = por %p552_p2, %p551_p10 }
  0x2f   : > { %p554_p0 = pnand %p553_p13, %p549_p12 }
  0x31   : > { %557 = shalt.err (!%p554_p0)
}
  0x32   : > { %s558_s8 = scalar_lea.vmem %s161_s22, 256  ;;  %s646_s7 = smov [#allocation2]  }
  0x33   : > { %p559_p1 = scmp.ne.s32.totalorder %s161_s22, %s558_s8  ;;  %s563_s9 = sshll.u32 %s646_s7, 4  ;;  %s564_s9 = int_to_ptr.vmem [resolvable:$false] %s563_s9 }
  0x34   : > { %s565_s10 = scalar_lea.vmem %s564_s9, 512  ;;  %p566_p5 = scmp.lt.s32.totalorder %s161_s22, %s564_s9 }
  0x35   : > { %p561_p6 = pnand %p559_p1, %p547_p7  ;;  %p567_p9 = scmp.lt.s32.totalorder %s565_s10, %s558_s8 }
  0x37   : > { %p562_p3 = pneg %p561_p6  ;;  %p568_p4 = por %p567_p9, %p566_p5 }
  0x39   : > { %p569_p8 = pnand %p568_p4, %p562_p3 }
  0x3b   : > { %572 = shalt.err (!%p569_p8)
}
  0x3c   : > { %475 = dma.hbm_to_vmem [thread:$0]  (!%p754_p11), %s752_s17, 256, %s161_s22, %s149_s25  }
  0x3d   : > { %p845_p12 = scmp.ne.s32.totalorder %s840_s20, 0 }
  0x3e   : > { %s775_s11 = sand.u32 (!%p845_p12), 1, %s633_s13   ;;  %p846_p1 = scmp.ne.s32.totalorder (!%p845_p12), %s838_s18, 0 }
  0x3f   : > { %169 = sbr.rel (%p845_p12) target bundleno = 317 (0x13d), region = 32  ;;  %s416_s21 = sshll.u32 (!%p845_p12), %s775_s11, 4 }
  0x40   : > { %s172_s26 = scalar_lea.sflag (!%p845_p12), [#allocation3], %s775_s11  ;;  %s779_s27 = scalar_lea.vmem (!%p845_p12), [#allocation2], %s416_s21 }
  0x44   : > { %616 = dma.done.wait (%p846_p1), %s172_s26, 256  }
  0x45   : > { %618 = vsyncadd (%p846_p1), %s172_s26, 4294967040  ;;  %p847_p4 = scmp.eq.s32.totalorder %s689_s16, 0 }
  0x47   : > { %620 = dma.done.wait (%p847_p4), [#allocation6], 4096   ;;  %p848_p6 = pmov %p847_p4 }
  0x48   : > { %v235_v0 = vld [vmem:[#allocation5 + $0xf8] sm:$0xff]  ;;  %v234_v2 = vld [vmem:[#allocation5 + $0xf0] sm:$0xff]  ;;  %v233_v4 = vld [vmem:[#allocation5 + $0xe8] sm:$0xff]  ;;  %s418_s18 = sshll.u32 %s775_s11, 3  ;;  %s421_s22 = sshll.u32 %s689_s16, 7 }
  0x49   : > { %622 = vsyncadd (%p848_p6), [#allocation6], 4294963200  ;;  %v219_v1 = vld [vmem:[#allocation5 + $0x78] sm:$0xff]  ;;  %425 = vmatprep.subr.mxu0 %v235_v0  ;;  %v218_v3 = vld [vmem:[#allocation5 + $0x70] sm:$0xff]  ;;  %s201_s23 = scalar_lea.vmem [#allocation7], %s418_s18  ;;  %s326_s30 = scalar_lea.hbm %s833_s3, %s421_s22 }
  0x4a   : > { %426 = vmatpush3.msra.mxu0 %v219_v1  ;;  %v217_v5 = vld [vmem:[#allocation5 + $0x68] sm:$0xff]  ;;  %v232_v6 = vld [vmem:[#allocation5 + $0xe0] sm:$0xff]  ;;  %v231_v8 = vld [vmem:[#allocation5 + $0xd8] sm:$0xff]  ;;  %s328_s25 = sshll.u32 %s201_s23, 4  ;;  %s315_s4 = scalar_lea.sflag [#allocation4], %s775_s11  ;;  %s329_s25 = int_to_ptr.vmem [resolvable:$true] %s328_s25 }
  0x4b   : > { %427 = vmatprep.subr.mxu0 %v234_v2  ;;  %v216_v7 = vld [vmem:[#allocation5 + $0x60] sm:$0xff]  ;;  %v215_v9 = vld [vmem:[#allocation5 + $0x58] sm:$0xff]  ;;  %v230_v10 = vld [vmem:[#allocation5 + $0xd0] sm:$0xff]  ;;  %s573_s8 = scalar_lea.vmem %s329_s25, 128  ;;  %p849_p3 = scmp.ne.s32.totalorder %s843_s6, 0 }
  0x4c   : > { %428 = vmatpush3.msra.mxu0 %v218_v3  ;;  %v214_v11 = vld [vmem:[#allocation5 + $0x50] sm:$0xff]  ;;  %v229_v12 = vld [vmem:[#allocation5 + $0xc8] sm:$0xff]  ;;  %v228_v15 = vld [vmem:[#allocation5 + $0xc0] sm:$0xff]  ;;  %p574_p8 = scmp.ne.s32.totalorder %s329_s25, %s573_s8  ;;  %s647_s7 = smov [#allocation7]  }
  0x4d   : > { %429 = vmatprep.subr.mxu0 %v233_v4  ;;  %v203_v13 = vld [vmem:[%s779_s27 + $0x8] sm:$0xff]  ;;  %v212_v16 = vld [vmem:[#allocation5 + $0x40] sm:$0xff]  ;;  %v226_v19 = vld [vmem:[#allocation5 + $0xb0] sm:$0xff]  ;;  %s577_s9 = sshll.u32 %s647_s7, 4  ;;  %s578_s9 = int_to_ptr.vmem [resolvable:$false] %s577_s9 }
  0x4e   : > { %430 = vmatpush3.msra.mxu0 %v217_v5  ;;  %v213_v14 = vld [vmem:[#allocation5 + $0x48] sm:$0xff]  ;;  %307 = vmatprep.mubr.f32.mxu0 %v203_v13  ;;  %v227_v17 = vld [vmem:[#allocation5 + $0xb8] sm:$0xff]  ;;  %v210_v20 = vld [vmem:[#allocation5 + $0x30] sm:$0xff]  ;;  %p575_p11 = pnand %p574_p8, %p849_p3  ;;  %s579_s16 = scalar_lea.vmem %s578_s9, 256 }
  0x4f   : > { %431 = vmatprep.subr.mxu0 %v232_v6  ;;  %v211_v18 = vld [vmem:[#allocation5 + $0x38] sm:$0xff]  ;;  %v225_v21 = vld [vmem:[#allocation5 + $0xa8] sm:$0xff]  ;;  %v224_v23 = vld [vmem:[#allocation5 + $0xa0] sm:$0xff]  ;;  %p580_p10 = scmp.lt.s32.totalorder %s329_s25, %s578_s9  ;;  %p581_p2 = scmp.lt.s32.totalorder %s579_s16, %s573_s8 }
  0x50   : > { %432 = vmatpush3.msra.mxu0 %v216_v7  ;;  %v209_v22 = vld [vmem:[#allocation5 + $0x28] sm:$0xff]  ;;  %v208_v24 = vld [vmem:[#allocation5 + $0x20] sm:$0xff]  ;;  %v223_v25 = vld [vmem:[#allocation5 + $0x98] sm:$0xff]  ;;  %p576_p7 = pneg %p575_p11 }
  0x51   : > { %433 = vmatprep.subr.mxu0 %v231_v8  ;;  %v207_v26 = vld [vmem:[#allocation5 + $0x18] sm:$0xff]  ;;  %v222_v27 = vld [vmem:[#allocation5 + $0x90] sm:$0xff]  ;;  %v221_v29 = vld [vmem:[#allocation5 + $0x88] sm:$0xff]  ;;  %p582_p13 = por %p581_p2, %p580_p10 }
  0x52   : > { %434 = vmatpush3.msra.mxu0 %v215_v9  ;;  %v206_v28 = vld [vmem:[#allocation5 + $0x10] sm:$0xff]  ;;  %v205_v30 = vld [vmem:[#allocation5 + $0x8] sm:$0xff]  ;;  %v220_v31 = vld [vmem:[#allocation5 + $0x80] sm:$0xff] }
  0x53   : > { %435 = vmatprep.subr.mxu0 %v230_v10  ;;  %v204_v32 = vld [vmem:[#allocation5] sm:$0xff]  ;;  %p583_p0 = pnand %p582_p13, %p576_p7 }
  0x54   : > { %436 = vmatpush3.msra.mxu0 %v214_v11  ;;  %v202_v33 = vld [vmem:[%s779_s27] sm:$0xff] }
  0x55   : > { %437 = vmatprep.subr.mxu0 %v229_v12  ;;  %v419_v35 = vld [vmem:[%s832_s2] ss:$0 sm:$0xff] }
  0x56   : > { %438 = vmatpush3.msra.mxu0 %v213_v14 }
  0x57   : > { %439 = vmatprep.subr.mxu0 %v228_v15 }
  0x58   : > { %440 = vmatpush3.msra.mxu0 %v212_v16 }
  0x59   : > { %441 = vmatprep.subr.mxu0 %v227_v17 }
  0x5a   : > { %442 = vmatpush3.msra.mxu0 %v211_v18 }
  0x5b   : > { %443 = vmatprep.subr.mxu0 %v226_v19 }
  0x5c   : > { %444 = vmatpush3.msra.mxu0 %v210_v20 }
  0x5d   : > { %445 = vmatprep.subr.mxu0 %v225_v21 }
  0x5e   : > { %446 = vmatpush3.msra.mxu0 %v209_v22 }
  0x5f   : > { %447 = vmatprep.subr.mxu0 %v224_v23 }
  0x60   : > { %448 = vmatpush3.msra.mxu0 %v208_v24 }
  0x61   : > { %449 = vmatprep.subr.mxu0 %v223_v25 }
  0x62   : > { %450 = vmatpush3.msra.mxu0 %v207_v26 }
  0x63   : > { %451 = vmatprep.subr.mxu0 %v222_v27 }
  0x64   : > { %452 = vmatpush3.msra.mxu0 %v206_v28 }
  0x65   : > { %453 = vmatprep.subr.mxu0 %v221_v29 }
  0x66   : > { %454 = vmatpush3.msra.mxu0 %v205_v30 }
  0x67   : > { %455 = vmatprep.subr.mxu0 %v220_v31 }
  0x68   : > { %456 = vmatpush3.msra.mxu0 %v204_v32 }
  0x69   : > { %308 = vmatmul.mubr.f32.vlgmr.msra.gmra.mxu0 %v202_v33 }
 0x129   : > { %v457_v34 = vpop.f32.mrf.mxu0 }
 0x12b   : > { %v458_v36 = vpop.f32.mrf.mxu0 }
 0x12c   : > { %v459_v37 = vadd.f32 %v458_v36, %v457_v34 }
 0x12e   : > { %v310_v38 = vadd.f32 %v459_v37, %v419_v35 }
 0x130   : > { %313 = vst [vmem:[%s201_s23] sm:$0xff] %v310_v38 }
 0x131   : > { %586 = shalt.err (!%p583_p0)
}
 0x132   : > { %s587_s10 = scalar_lea.hbm %s326_s30, 128  ;;  %s591_s26 = scalar_lea.hbm %s833_s3, 256 }
 0x133   : > { %p588_p5 = scmp.ne.s32.totalorder %s326_s30, %s587_s10  ;;  %p592_p1 = scmp.lt.s32.totalorder %s326_s30, %s833_s3 }
 0x134   : > { %p593_p4 = scmp.lt.s32.totalorder %s591_s26, %s587_s10 }
 0x135   : > { %p589_p9 = pnand %p588_p5, %p849_p3 }
 0x136   : > { %p594_p6 = por %p593_p4, %p592_p1 }
 0x137   : > { %p590_p12 = pneg %p589_p9 }
 0x139   : > { %p595_p8 = pnand %p594_p6, %p590_p12 }
 0x13b   : > { %598 = shalt.err (!%p595_p8)
}
 0x13c   : > { %466 = dma.vmem_to_hbm [thread:$0]  (%p849_p3), %s329_s25, 128, %s326_s30, %s315_s4  }
 0x13d PF: > { %s340_s20 = sand.u32 1, %s629_s12   ;;  %p850_p11 = scmp.ne.s32.totalorder %s839_s19, 0 }
 0x13e   : > { %p851_p7 = scmp.ge.s32.totalorder %s641_s15, 2  ;;  %s341_s17 = scalar_lea.sflag [#allocation4], %s340_s20 }
 0x140   : > { %p477_p10 = pnand %p851_p7, %p850_p11 }
 0x142   : > { %p478_p2 = pneg %p477_p10 }
 0x144   : > { %624 = dma.done.wait (%p478_p2), %s341_s17, 128  }
 0x145   : > { %626 = vsyncadd (%p478_p2), %s341_s17, 4294967168  ;;  %p17_p13 = scmp.ge.s32.totalorder %s722_s24, 4   ;;  %s852_s12 = smov %s633_s13 }
 0x146   : > { %s853_s13 = smov %s637_s14  ;;  %s854_s14 = smov %s739_s5 }
 0x147   : > { %s855_s15 = smov %s722_s24  ;;  %19 = sbr.rel (!%p17_p13) target bundleno = 6 (0x6), region = 81 }
 0x14c   :  { %346 = vsyncpa [#allocation3], 1 }
 0x14d   :  { %348 = vsyncpa [#allocation3 + $0x1], 1 }
 0x14e   :  { %349 = vsyncpa [#allocation6], 1 }
 0x14f   :  { %350 = vsyncpa [#allocation4], 1 }
 0x150   :  { %352 = vsyncpa [#allocation4 + $0x1], 1 }

</bundles_post_ra>
